<compile_context>
chip_gen: v5e
topology: v5e:2x2
jax: 0.10.0
libtpu: 0.0.40
codegen_flags: <defaults>
</compile_context>

<pallas_src>
import jax
import jax.numpy as jnp
from jax import lax
from jax.experimental import pallas as pl
from jax.experimental.pallas import tpu as pltpu

_TM_MAX = 8192   # rows per grid step cap (~1 MB of HBM traffic per step)
_LANE = 128


def _mlp_kernel(x_ref, w1_ref, b1_ref, w2_ref, b2_ref, h_ref, y_ref):
    # linear1 + ReLU : (tm, 10) x (20, 10)^T -> (tm, 20) on the MXU.
    x = x_ref[...]
    h = lax.dot_general(x, w1_ref[...],
                        dimension_numbers=(((1,), (1,)), ((), ())),
                        preferred_element_type=jnp.float32)
    h = jnp.maximum(h + b1_ref[...], 0.0)          # b1 (1, 20) broadcasts over rows
    h_ref[...] = h.astype(h_ref.dtype)             # 'linear1' hook activation

    # linear2 (out_features == 1): VPU multiply + cross-lane reduce — no MXU.
    y = jnp.sum(h * w2_ref[...], axis=-1, keepdims=True)   # (tm, 1)
    y_ref[...] = y + b2_ref[0]                     # scalar bias read from SMEM


def _round_up(n, m):
    return ((n + m - 1) // m) * m


def _choose_tile(batch):
    """Rows per grid step.

    Multiple of 128 (8 for tiny batches), capped at _TM_MAX so the
    double-buffered natural-layout blocks fit scoped VMEM, and — for large
    batches — small enough that the grid keeps >= 4 steps so v7x's two
    TensorCores can split the "parallel" batch axis.
    """
    if batch < _LANE:
        return max(8, _round_up(batch, 8))             # single small block
    if batch < 4 * _LANE:
        return _LANE
    return min(_TM_MAX, max(_LANE, (batch // 4) // _LANE * _LANE))


def hook_model_forward(x, w1, b1, w2, b2, hook_dtype=jnp.float32):
    """HookModel forward in a single Pallas kernel.

    x  : (B, 10)   input (PyTorch layout)
    w1 : (20, 10)  nn.Linear(10, 20).weight      b1 : (20,)
    w2 : (1, 20)   nn.Linear(20, 1).weight       b2 : (1,)
    Returns (y, activations) with y of shape (B, 1) and an activations dict
    mirroring the module's forward hooks ('linear1' activation is emitted in
    `hook_dtype`; pass jnp.bfloat16 to halve the dominant HBM stream).
    """
    B, D_in = x.shape
    H = w1.shape[0]
    D_out = w2.shape[0]
    assert D_out == 1 and w1.shape[1] == D_in and w2.shape[1] == H

    tm = _choose_tile(B)
    padded_B = _round_up(B, tm)
    grid = (padded_B // tm,)

    x_pad = x if padded_B == B else jnp.pad(x, ((0, padded_B - B), (0, 0)))
    b1_row = b1.reshape(1, H)        # broadcasts over rows in-kernel
    # w2 already has shape (1, H) — broadcasts over rows in-kernel.

    h_pad, y_pad = pl.pallas_call(
        _mlp_kernel,
        grid=grid,
        in_specs=[
            pl.BlockSpec((tm, D_in), lambda i: (i, 0)),          # x batch tile
            pl.BlockSpec((H, D_in), lambda i: (0, 0)),           # W1 (VMEM-resident)
            pl.BlockSpec((1, H), lambda i: (0, 0)),              # b1 row
            pl.BlockSpec((1, H), lambda i: (0, 0)),              # w2 row
            pl.BlockSpec(memory_space=pltpu.MemorySpace.SMEM),   # b2 scalar
        ],
        out_specs=(
            pl.BlockSpec((tm, H), lambda i: (i, 0)),             # hidden ('linear1')
            pl.BlockSpec((tm, 1), lambda i: (i, 0)),             # output ('linear2')
        ),
        out_shape=(
            jax.ShapeDtypeStruct((padded_B, H), hook_dtype),
            jax.ShapeDtypeStruct((padded_B, 1), jnp.float32),
        ),
        compiler_params=pltpu.CompilerParams(
            dimension_semantics=("parallel",),        # v7x: 2 TCs split batch
            vmem_limit_bytes=48 * 1024 * 1024,        # covers v5e's 16 MiB default
        ),
    )(x_pad, w1, b1_row, w2, b2)

    # Padded rows are garbage (relu(b1)-derived) — slice them off before any
    # consumer sees them (correctness requirement from the review).
    if padded_B != B:
        h_pad = h_pad[:B]
        y_pad = y_pad[:B]

    activations = {"linear1": h_pad, "linear2": y_pad}
    return y_pad, activations


def init_params(key):
    """Deterministic init in nn.Linear layouts: weight (out, in), bias (out,)."""
    k1, k2, k3, k4 = jax.random.split(key, 4)
    D_in, H, D_out = 10, 20, 1
    bound1 = 1.0 / jnp.sqrt(D_in)
    bound2 = 1.0 / jnp.sqrt(H)
    w1 = jax.random.uniform(k1, (H, D_in), jnp.float32, -bound1, bound1)
    b1 = jax.random.uniform(k2, (H,), jnp.float32, -bound1, bound1)
    w2 = jax.random.uniform(k3, (D_out, H), jnp.float32, -bound2, bound2)
    b2 = jax.random.uniform(k4, (D_out,), jnp.float32, -bound2, bound2)
    return w1, b1, w2, b2


def _reference(x, w1, b1, w2, b2):
    h = jnp.maximum(x @ w1.T + b1, 0.0)
    return h, h @ w2.T + b2


if __name__ == "__main__":
    key = jax.random.PRNGKey(0)
    k_x, k_p, k_x2 = jax.random.split(key, 3)
    w1, b1, w2, b2 = init_params(k_p)

    # Matches the module's example input: x = torch.randn(3, 10)
    x = jax.random.normal(k_x, (3, 10), dtype=jnp.float32)
    y, acts = hook_model_forward(x, w1, b1, w2, b2)
    jax.block_until_ready(y)
    jax.block_until_ready(acts["linear1"])

    h_ref, y_ref = _reference(x, w1, b1, w2, b2)
    assert y.shape == (3, 1)
    assert acts["linear1"].shape == (3, 20)
    assert jnp.allclose(y, y_ref, atol=1e-5), "output mismatch"
    assert jnp.allclose(acts["linear1"], h_ref, atol=1e-5), "linear1 activation mismatch"
    assert jnp.allclose(acts["linear2"], y_ref, atol=1e-5), "linear2 activation mismatch"

    # Second, ragged batch exercises the padded / multi-step pipelined path.
    x2 = jax.random.normal(k_x2, (300, 10), dtype=jnp.float32)
    y2, acts2 = hook_model_forward(x2, w1, b1, w2, b2)
    jax.block_until_ready(y2)
    h2_ref, y2_ref = _reference(x2, w1, b1, w2, b2)
    assert y2.shape == (300, 1)
    assert jnp.allclose(y2, y2_ref, atol=1e-5), "ragged-batch output mismatch"
    assert jnp.allclose(acts2["linear1"], h2_ref, atol=1e-5), "ragged-batch linear1 mismatch"

    print("KERNEL_OK")
</pallas_src>

<mosaic_0001>
module attributes {stable_mosaic.version = 11 : i64} {
  func.func @_mlp_kernel(%arg0: i32, %arg1: memref<8x10xf32, #tpu.memory_space<vmem>>, %arg2: memref<20x10xf32, #tpu.memory_space<vmem>>, %arg3: memref<1x20xf32, #tpu.memory_space<vmem>>, %arg4: memref<1x20xf32, #tpu.memory_space<vmem>>, %arg5: memref<1xf32, #tpu.memory_space<smem>>, %arg6: memref<8x20xf32, #tpu.memory_space<vmem>>, %arg7: memref<8x1xf32, #tpu.memory_space<vmem>>) attributes {dimension_semantics = [#tpu.dimension_semantics<parallel>], iteration_bounds = array<i64: 1>, scalar_prefetch = 0 : i64, scratch_operands = 0 : i64, tpu.core_type = #tpu.core_type<tc>, window_params = [{transform_indices = @transform_0, window_bounds = array<i64: 8, 10>}, {pipeline_mode = #tpu.pipeline_mode<synchronous>, transform_indices = @transform_1, window_bounds = array<i64: 20, 10>}, {pipeline_mode = #tpu.pipeline_mode<synchronous>, transform_indices = @transform_2, window_bounds = array<i64: 1, 20>}, {pipeline_mode = #tpu.pipeline_mode<synchronous>, transform_indices = @transform_3, window_bounds = array<i64: 1, 20>}, {transform_indices = @transform_4, window_bounds = array<i64: 1>}, {transform_indices = @transform_5, window_bounds = array<i64: 8, 20>}, {transform_indices = @transform_6, window_bounds = array<i64: 8, 1>}]} {
    %c0 = arith.constant 0 : index
    %c0_0 = arith.constant 0 : index
    %0 = vector.load %arg1[%c0, %c0_0] : memref<8x10xf32, #tpu.memory_space<vmem>>, vector<8x10xf32>
    %c0_1 = arith.constant 0 : index
    %c0_2 = arith.constant 0 : index
    %1 = vector.load %arg2[%c0_1, %c0_2] : memref<20x10xf32, #tpu.memory_space<vmem>>, vector<20x10xf32>
    %cst = arith.constant dense<0.000000e+00> : vector<8x20xf32>
    %2 = tpu.matmul %0, %1, %cst {dimension_numbers = #tpu.dot_dimension_numbers<[1], [1], [0], [0], [0, 0, 1, 0], [], []>} : vector<8x10xf32>, vector<20x10xf32>, vector<8x20xf32> -> vector<8x20xf32>
    %c0_3 = arith.constant 0 : index
    %c0_4 = arith.constant 0 : index
    %3 = vector.load %arg3[%c0_3, %c0_4] : memref<1x20xf32, #tpu.memory_space<vmem>>, vector<1x20xf32>
    %4 = vector.broadcast %3 : vector<1x20xf32> to vector<8x20xf32>
    %5 = arith.addf %2, %4 : vector<8x20xf32>
    %cst_5 = arith.constant 0.000000e+00 : f32
    %6 = vector.broadcast %cst_5 : f32 to vector<8x20xf32>
    %7 = arith.maximumf %5, %6 : vector<8x20xf32>
    %c0_6 = arith.constant 0 : index
    %c0_7 = arith.constant 0 : index
    %8 = vector.load %arg6[%c0_6, %c0_7] : memref<8x20xf32, #tpu.memory_space<vmem>>, vector<8x20xf32>
    tpu.vector_store %arg6[%c0_6, %c0_7], %7 {strides = array<i32>} : memref<8x20xf32, #tpu.memory_space<vmem>>, vector<8x20xf32>,
    %c0_8 = arith.constant 0 : index
    %c0_9 = arith.constant 0 : index
    %9 = vector.load %arg4[%c0_8, %c0_9] : memref<1x20xf32, #tpu.memory_space<vmem>>, vector<1x20xf32>
    %10 = vector.broadcast %9 : vector<1x20xf32> to vector<8x20xf32>
    %11 = arith.mulf %7, %10 : vector<8x20xf32>
    %cst_10 = arith.constant dense<0.000000e+00> : vector<8xf32>
    %12 = vector.multi_reduction <add>, %11, %cst_10 [1] : vector<8x20xf32> to vector<8xf32>
    %13 = vector.shape_cast %12 : vector<8xf32> to vector<8x1xf32>
    %c0_11 = arith.constant 0 : index
    %14 = memref.load %arg5[%c0_11] : memref<1xf32, #tpu.memory_space<smem>>
    %15 = vector.broadcast %14 : f32 to vector<8x1xf32>
    %16 = arith.addf %13, %15 : vector<8x1xf32>
    %c0_12 = arith.constant 0 : index
    %c0_13 = arith.constant 0 : index
    %17 = vector.load %arg7[%c0_12, %c0_13] : memref<8x1xf32, #tpu.memory_space<vmem>>, vector<8x1xf32>
    tpu.vector_store %arg7[%c0_12, %c0_13], %16 {strides = array<i32>} : memref<8x1xf32, #tpu.memory_space<vmem>>, vector<8x1xf32>,
    return
  }
  func.func @transform_0(%arg0: i32) -> (i32, i32) {
    %c0_i32 = arith.constant 0 : i32
    %c0_i32_0 = arith.constant 0 : i32
    return %arg0, %c0_i32 : i32, i32
  }
  func.func @transform_1(%arg0: i32) -> (i32, i32) {
    %c0_i32 = arith.constant 0 : i32
    %c0_i32_0 = arith.constant 0 : i32
    %c0_i32_1 = arith.constant 0 : i32
    return %c0_i32, %c0_i32_0 : i32, i32
  }
  func.func @transform_2(%arg0: i32) -> (i32, i32) {
    %c0_i32 = arith.constant 0 : i32
    %c0_i32_0 = arith.constant 0 : i32
    %c0_i32_1 = arith.constant 0 : i32
    return %c0_i32, %c0_i32_0 : i32, i32
  }
  func.func @transform_3(%arg0: i32) -> (i32, i32) {
    %c0_i32 = arith.constant 0 : i32
    %c0_i32_0 = arith.constant 0 : i32
    %c0_i32_1 = arith.constant 0 : i32
    return %c0_i32, %c0_i32_0 : i32, i32
  }
  func.func @transform_4(%arg0: i32) -> i32 {
    %c0_i32 = arith.constant 0 : i32
    %c0_i32_0 = arith.constant 0 : i32
    return %c0_i32 : i32
  }
  func.func @transform_5(%arg0: i32) -> (i32, i32) {
    %c0_i32 = arith.constant 0 : i32
    %c0_i32_0 = arith.constant 0 : i32
    return %arg0, %c0_i32 : i32, i32
  }
  func.func @transform_6(%arg0: i32) -> (i32, i32) {
    %c0_i32 = arith.constant 0 : i32
    %c0_i32_0 = arith.constant 0 : i32
    return %arg0, %c0_i32 : i32, i32
  }
}

</mosaic_0001>

<bundles_post_ra>
// kernel: tpu_custom_call.1
= control target key start
LH: loop header
LB: loop body
LE: loop exit
PB: predicated region body
PF: predicated region fallthrough
CT: control target
= control target key end

     0   :  { %vm32_vm0 = vcmask 80896   ;;  %s197_s0 = inlined_call_operand.vmem [shape: f32[8,10], index: 0, kind: input, shape index: {}]   ;;  %s198_s1 = inlined_call_operand.vmem [shape: f32[20,10], index: 1, kind: input, shape index: {}]   ;;  %s199_s2 = inlined_call_operand.vmem [shape: f32[1,20], index: 2, kind: input, shape index: {}]   ;;  %s200_s3 = inlined_call_operand.vmem [shape: f32[1,20], index: 3, kind: input, shape index: {}]   ;;  %s201_s4 = inlined_call_operand.<no memory space> [shape: f32[1], index: 4, kind: input, shape index: {}]   ;;  %s202_s5 = inlined_call_operand.hbm [shape: f32[8,20], index: 5, kind: output, shape index: {0}]   ;;  %s203_s6 = inlined_call_operand.vmem [shape: f32[8,1], index: 6, kind: output, shape index: {1}]  }
   0x1   :  { %v27_v0 = vld [vmem:[%s198_s1 + $0x10] sm:$0xf]  ;;  %v26_v1 = vld [vmem:[%s198_s1 + $0x8] sm:$0xff] }
   0x2   :  { %101 = vmatpush.xpose.msk.msra.mxu0 %vm32_vm0, %v27_v0 }
   0x3   :  { %13 = vsyncpa [#allocation4], 0  ;;  %v25_v2 = vld [vmem:[%s198_s1] sm:$0xff]  ;;  %s134_s7 = smov [#allocation3]   ;;  %s88_s11 = sshll.u32 %s202_s5, 4  ;;  %vm66_vm1 = vcmask 162816   ;;  %v77_v11 = vstv %s201_s4  ;;  %s89_s11 = int_to_ptr.hbm [resolvable:$true] %s88_s11 }
   0x4   :  { %v24_v3 = vld [vmem:[%s197_s0] sm:$0xff]  ;;  %s86_s8 = sshll.u32 %s134_s7, 4  ;;  %vm79_vm2 = vcmask 7168   ;;  %s87_s8 = int_to_ptr.vmem [resolvable:$true] %s86_s8 }
   0x5   :  { %v106_v4 = vld [vmem:[%s199_s2] ss:$0 sm:$0xff] }
   0x6   :  { %102 = vmatpush.xpose.msk.msra.mxu0 %vm32_vm0, %v26_v1  ;;  %v107_v7 = vld [vmem:[%s200_s3] ss:$0 sm:$0xff] }
   0xa   :  { %103 = vmatpush.xpose.msk.msra.mxu0 %vm32_vm0, %v25_v2 }
   0xd   :  { %104 = vmatmul.msk.f32.vlgmr.msra.gmra.mxu0 %vm32_vm0, %v24_v3 }
  0x8a   :  { %v62_v5 = vpop.f32.mrf.mxu0 }
  0x8b   :  { %v63_v6 = vadd.f32 %v106_v4, %v62_v5 }
  0x8d   :  { %v65_v8 = vmax.f32 %v63_v6, 0.0 }
  0x8f   :  { %67 = vst.msk [vmem:[#allocation3] sm:$0xff] %vm66_vm1, %v65_v8  ;;  %v72_v9 = vmul.f32 %v107_v7, %v65_v8 }
  0x90   :  { %91 = dma.vmem_to_hbm [thread:$0]  %s87_s8, 128, %s89_s11, [#allocation4]  }
  0x91   :  { %v73_v10 = vsel %vm66_vm1, %v72_v9, 0.0 }
  0x92   :  { %74 = vadd.xlane.f32.xlu0 %v73_v10 }
 0x105   :  { %v75_v12 = vpop.xlane.xlu0 %74 }
 0x106   :  { %v78_v13 = vadd.f32 %v77_v11, %v75_v12 }
 0x108   :  { %80 = vst.msk [vmem:[%s203_s6] sm:$0xff] %vm79_vm2, %v78_v13 }
 0x109   :  { %132 = dma.done.wait [#allocation4], 128  }
 0x10a   :  { %133 = vsyncadd [#allocation4], 4294967168 }
 0x10b   :  { %100 = vsyncpa [#allocation4], 1 }

</bundles_post_ra>
